<compile_context>
chip_gen: v6e
topology: v6e:2x2x1
jax: 0.10.0
libtpu: 0.0.40
codegen_flags: <defaults>
</compile_context>

<pallas_src>
import functools
import math

import jax
import jax.numpy as jnp
from jax import lax
from jax.experimental import pallas as pl
from jax.experimental.pallas import tpu as pltpu


_INIT = {"sum": 0.0, "mean": 0.0, "prod": 1.0,
         "max": -float("inf"), "min": float("inf")}
_COMBINE = {"sum": jnp.add, "mean": jnp.add, "prod": jnp.multiply,
            "max": jnp.maximum, "min": jnp.minimum}
_BLOCK_REDUCE = {"sum": jnp.sum, "mean": jnp.sum, "prod": jnp.prod,
                 "max": jnp.max, "min": jnp.min}


def _vmem_params():
    """(vmem_limit_bytes, per-input-tile byte budget), generation aware."""
    try:
        cap = int(pltpu.get_tpu_info().vmem_capacity_bytes)
    except Exception:
        cap = 64 * 1024 * 1024          # conservative default (v7x per-core VMEM)
    cap = max(cap, 32 * 1024 * 1024)
    vmem_limit = min((cap * 5) // 8, 64 * 1024 * 1024)   # v6e/v5e: 64MiB, v7x: 40MiB
    # double-buffered input tiles + output blocks + f32 accumulator + headroom
    return vmem_limit, vmem_limit // 5


def _round_tile(n, max_tile, align):
    """Tile for extent n: full extent if it fits, else largest multiple of `align`
    <= max_tile (at least `align`). Never falls back to an over-budget full dim."""
    n = int(n)
    max_tile = int(max_tile)
    if n <= max_tile:
        return n
    return int(max(align, (max_tile // align) * align))


def _out_dtype(x, op):
    if op == "mean" and not jnp.issubdtype(x.dtype, jnp.floating):
        return jnp.float32
    return x.dtype


# ---------------------------------------------------------------------------
# Reduction along a given dim.
# ---------------------------------------------------------------------------
def _agg_dim_kernel(op, red, tile_r, ragged_r, x_ref, o_ref, *scratch):
    """General path. x_ref: (TO, TR, TI); o_ref: (TO, TI); optional f32 scratch.

    Grid = (outer_tiles, inner_tiles, reduce_tiles); reduce axis last."""
    acc_ref = scratch[0] if scratch else o_ref      # accumulate into o_ref if f32
    k = pl.program_id(2)

    @pl.when(k == 0)
    def _():
        acc_ref[...] = jnp.full(acc_ref.shape, _INIT[op], dtype=acc_ref.dtype)

    x = x_ref[...].astype(jnp.float32)
    if ragged_r:                                    # identity-mask the ragged block
        r = lax.broadcasted_iota(jnp.int32, x.shape, 1)
        x = jnp.where(k * tile_r + r < red, x, _INIT[op])
    part = _BLOCK_REDUCE[op](x, axis=1)             # (TO, TI)
    acc_ref[...] = _COMBINE[op](acc_ref[...], part.astype(acc_ref.dtype))

    @pl.when(k == pl.num_programs(2) - 1)
    def _():
        res = acc_ref[...].astype(jnp.float32)
        if op == "mean":
            res = res * (1.0 / red)
        o_ref[...] = res.astype(o_ref.dtype)


def _agg_lastdim_kernel(op, red, tile_r, ragged_r, x_ref, o_ref, acc_ref):
    """Lane-dense last-dim path (inner == 1). x_ref: (TO, TR); o_ref: (TO, 1);
    acc_ref: (TO, TR) f32. Per-step work is a pure elementwise (VPU) combine;
    the cross-lane reduce happens once at the last reduce step."""
    k = pl.program_id(1)

    @pl.when(k == 0)
    def _():
        acc_ref[...] = jnp.full(acc_ref.shape, _INIT[op], dtype=jnp.float32)

    x = x_ref[...].astype(jnp.float32)
    if ragged_r:
        c = lax.broadcasted_iota(jnp.int32, x.shape, 1)
        x = jnp.where(k * tile_r + c < red, x, _INIT[op])
    acc_ref[...] = _COMBINE[op](acc_ref[...], x)

    @pl.when(k == pl.num_programs(1) - 1)
    def _():
        res = _BLOCK_REDUCE[op](acc_ref[...], axis=1, keepdims=True)   # (TO, 1)
        if op == "mean":
            res = res * (1.0 / red)
        o_ref[...] = res.astype(o_ref.dtype)


def aggregate_dim_pallas(x, op, dim, keepdim=False):
    """Equivalent of op(x, dim=dim, keepdim=keepdim) for op in sum/mean/max/min/prod."""
    assert op in _INIT, f"unsupported op: {op}"
    rank = x.ndim
    if dim < 0:
        dim += rank
    assert 0 <= dim < rank

    shape = x.shape
    outer = math.prod(shape[:dim])
    red = int(shape[dim])
    inner = math.prod(shape[dim + 1:])

    out_dtype = _out_dtype(x, op)
    itemsize = x.dtype.itemsize
    vmem_limit, tile_budget = _vmem_params()

    if inner == 1:
        # ---- lane-dense last-dim reduction ----
        x2 = x.reshape(outer, red)
        # budget counts double-buffered input (itemsize each) + f32 accumulator
        budget = max(1024, (2 * tile_budget) // (2 * itemsize + 4))
        tile_r = _round_tile(red, min(red, max(128, budget // 8)), 128)
        tile_o = _round_tile(outer, min(outer, max(8, budget // tile_r)), 8)
        grid = (pl.cdiv(outer, tile_o), pl.cdiv(red, tile_r))
        ragged_r = (red % tile_r) != 0
        kernel = functools.partial(_agg_lastdim_kernel, op, red, tile_r, ragged_r)

        flat = pl.pallas_call(
            kernel,
            out_shape=jax.ShapeDtypeStruct((outer, 1), out_dtype),
            grid_spec=pltpu.PrefetchScalarGridSpec(
                num_scalar_prefetch=0,
                grid=grid,
                in_specs=[pl.BlockSpec((tile_o, tile_r), lambda i, k: (i, k))],
                out_specs=pl.BlockSpec((tile_o, 1), lambda i, k: (i, 0)),
                scratch_shapes=(pltpu.VMEM((tile_o, tile_r), jnp.float32),),
            ),
            compiler_params=pltpu.CompilerParams(
                dimension_semantics=("parallel", "arbitrary"),
                vmem_limit_bytes=vmem_limit),
            cost_estimate=pl.CostEstimate(
                flops=int(x.size), transcendentals=0,
                bytes_accessed=int(x.size * itemsize
                                   + outer * jnp.dtype(out_dtype).itemsize)),
        )(x2)
    else:
        # ---- general (outer, red, inner) reduction; inner tiled lane-dense ----
        # TODO(synk): 1 < inner < 128 is handled correctly here but not lane-densely
        # (no red/inner lane folding); only inner == 1 gets the lane-dense path.
        x3 = x.reshape(outer, red, inner)
        budget = max(1024, tile_budget // itemsize)
        tile_i = _round_tile(inner, min(inner, max(128, budget // 64)), 128)
        tile_r = _round_tile(red, min(red, max(8, budget // (8 * tile_i))), 8)
        tile_o = _round_tile(outer, min(outer, max(8, budget // (tile_i * tile_r))), 8)
        grid = (pl.cdiv(outer, tile_o), pl.cdiv(inner, tile_i), pl.cdiv(red, tile_r))
        ragged_r = (red % tile_r) != 0
        kernel = functools.partial(_agg_dim_kernel, op, red, tile_r, ragged_r)

        # Accumulate directly into the resident output block when it is already f32.
        use_scratch = jnp.dtype(out_dtype) != jnp.dtype(jnp.float32)
        scratch = (pltpu.VMEM((tile_o, tile_i), jnp.float32),) if use_scratch else ()

        flat = pl.pallas_call(
            kernel,
            out_shape=jax.ShapeDtypeStruct((outer, inner), out_dtype),
            grid_spec=pltpu.PrefetchScalarGridSpec(
                num_scalar_prefetch=0,
                grid=grid,
                in_specs=[pl.BlockSpec((tile_o, tile_r, tile_i),
                                       lambda o, i, k: (o, k, i))],
                out_specs=pl.BlockSpec((tile_o, tile_i), lambda o, i, k: (o, i)),
                scratch_shapes=scratch,
            ),
            compiler_params=pltpu.CompilerParams(
                dimension_semantics=("parallel", "parallel", "arbitrary"),
                vmem_limit_bytes=vmem_limit),
            cost_estimate=pl.CostEstimate(
                flops=int(x.size), transcendentals=0,
                bytes_accessed=int(x.size * itemsize
                                   + outer * inner * jnp.dtype(out_dtype).itemsize)),
        )(x3)

    if keepdim:
        out_shape_full = shape[:dim] + (1,) + shape[dim + 1:]
    else:
        out_shape_full = shape[:dim] + shape[dim + 1:]
    return flat.reshape(out_shape_full)


# ---------------------------------------------------------------------------
# Full reduction (dim is None -> forward_nodim): scalar result.
# ---------------------------------------------------------------------------
def _agg_all_kernel(op, n_total, rows, cols, tile_r, tile_c, ragged_r, ragged_c,
                    x_ref, o_ref, acc_ref):
    """x_ref: (TR, TC); o_ref: (1, 1); acc_ref: (TR, TC) f32.
    Grid = (row_tiles, col_tiles), both sequential. The accumulator is a bag of
    elementwise partial combines; the full reduce to (1,1) happens once."""
    i = pl.program_id(0)
    j = pl.program_id(1)

    @pl.when((i == 0) & (j == 0))
    def _():
        acc_ref[...] = jnp.full(acc_ref.shape, _INIT[op], dtype=jnp.float32)

    x = x_ref[...].astype(jnp.float32)
    if ragged_r:
        r = lax.broadcasted_iota(jnp.int32, x.shape, 0)
        x = jnp.where(i * tile_r + r < rows, x, _INIT[op])
    if ragged_c:
        c = lax.broadcasted_iota(jnp.int32, x.shape, 1)
        x = jnp.where(j * tile_c + c < cols, x, _INIT[op])
    acc_ref[...] = _COMBINE[op](acc_ref[...], x)

    @pl.when((i == pl.num_programs(0) - 1) & (j == pl.num_programs(1) - 1))
    def _():
        res = _BLOCK_REDUCE[op](acc_ref[...], keepdims=True)   # (1, 1)
        if op == "mean":
            res = res * (1.0 / n_total)
        o_ref[...] = res.astype(o_ref.dtype)


def aggregate_all_pallas(x, op):
    """Equivalent of op(x) with no dim: scalar result."""
    assert op in _INIT, f"unsupported op: {op}"
    out_dtype = _out_dtype(x, op)
    n_total = int(x.size)
    itemsize = x.dtype.itemsize
    vmem_limit, tile_budget = _vmem_params()

    # 2D view (rows, cols): cols is an exact suffix product of the shape, grown
    # until lane-dense (>=512 wide) and capped once it is already >=128 wide.
    cols = 1
    for s in reversed(x.shape):
        if cols >= 512 or (cols >= 128 and cols * int(s) > 16384):
            break
        cols *= int(s)
    cols = max(cols, 1)
    rows = max(n_total // cols, 1)
    x2 = x.reshape(rows, cols)

    budget = max(1024, (2 * tile_budget) // (2 * itemsize + 4))
    tile_c = _round_tile(cols, min(cols, max(128, budget // 8)), 128)
    tile_r = _round_tile(rows, min(rows, max(8, budget // tile_c)), 8)
    grid = (pl.cdiv(rows, tile_r), pl.cdiv(cols, tile_c))
    ragged_r = (rows % tile_r) != 0
    ragged_c = (cols % tile_c) != 0

    # TODO(synk): no dual-TensorCore (v7x) split of this sequential reduction; a
    # parallel leading axis would need a wrapper-side combine of two partials.
    kernel = functools.partial(_agg_all_kernel, op, n_total, rows, cols,
                               tile_r, tile_c, ragged_r, ragged_c)

    out = pl.pallas_call(
        kernel,
        out_shape=jax.ShapeDtypeStruct((1, 1), out_dtype),
        grid_spec=pltpu.PrefetchScalarGridSpec(
            num_scalar_prefetch=0,
            grid=grid,
            in_specs=[pl.BlockSpec((tile_r, tile_c), lambda i, j: (i, j))],
            out_specs=pl.BlockSpec((1, 1), lambda i, j: (0, 0)),
            scratch_shapes=(pltpu.VMEM((tile_r, tile_c), jnp.float32),),
        ),
        compiler_params=pltpu.CompilerParams(
            dimension_semantics=("arbitrary", "arbitrary"),
            vmem_limit_bytes=vmem_limit),
        cost_estimate=pl.CostEstimate(
            flops=n_total, transcendentals=0,
            bytes_accessed=int(n_total * itemsize
                               + jnp.dtype(out_dtype).itemsize)),
    )(x2)
    return out.reshape(())


# ---------------------------------------------------------------------------
# The layer.
# ---------------------------------------------------------------------------
class AggregateLayer:
    """Pallas analog of pytorch_symbolic.useful_layers.AggregateLayer.

    `op` names the aggregation ("sum", "mean", "max", "min", "prod"), mirroring
    passing torch.sum / torch.mean / torch.amax / ... as the callable.
    """
    # TODO(synk): arbitrary Python callables for `op` (and index-returning ops like
    # torch.argmax or torch.max's (values, indices) form) are not supported.

    def __init__(self, op, dim=None, keepdim=False):
        assert op in _INIT, f"unsupported aggregation op: {op}"
        self.op = op
        self.dim = dim
        self.keepdim = keepdim
        if self.dim is None:
            self.forward = self.forward_nodim

    def forward(self, tensor):
        return aggregate_dim_pallas(tensor, self.op, self.dim, self.keepdim)

    def forward_nodim(self, tensor):
        return aggregate_all_pallas(tensor, self.op)

    def __call__(self, tensor):
        return self.forward(tensor)


if __name__ == "__main__":
    key = jax.random.PRNGKey(0)
    x = jax.random.normal(key, (2, 4, 16, 16), dtype=jnp.float32)

    # AggregateLayer(torch.sum, dim=1): (2,4,16,16) -> (2,16,16)   [general path]
    layer_sum = AggregateLayer("sum", dim=1)
    out = layer_sum(x)
    jax.block_until_ready(out)
    ref = jnp.sum(x, axis=1)
    assert out.shape == ref.shape
    assert jnp.allclose(out, ref, rtol=1e-6, atol=1e-6)

    # AggregateLayer(torch.mean, dim=-1, keepdim=True): (2,4,16,16) -> (2,4,16,1)
    # [lane-dense last-dim path]
    layer_mean = AggregateLayer("mean", dim=-1, keepdim=True)
    out2 = layer_mean(x)
    jax.block_until_ready(out2)
    ref2 = jnp.mean(x, axis=-1, keepdims=True)
    assert out2.shape == ref2.shape
    assert jnp.allclose(out2, ref2, rtol=1e-6, atol=1e-6)

    # AggregateLayer(torch.max) with dim=None -> forward_nodim, scalar result.
    layer_max = AggregateLayer("max", dim=None)
    out3 = layer_max(x)
    jax.block_until_ready(out3)
    ref3 = jnp.max(x)
    assert out3.shape == ref3.shape
    assert jnp.allclose(out3, ref3)

    # bf16 min over dim=0 (exercises the separate-f32-scratch general path).
    xb = x.astype(jnp.bfloat16)
    layer_min = AggregateLayer("min", dim=0)
    out4 = layer_min(xb)
    jax.block_until_ready(out4)
    ref4 = jnp.min(xb, axis=0)
    assert out4.shape == ref4.shape and out4.dtype == ref4.dtype
    assert jnp.allclose(out4.astype(jnp.float32), ref4.astype(jnp.float32))

    print("KERNEL_OK")
</pallas_src>

<mosaic_0001>
module attributes {stable_mosaic.version = 11 : i64} {
  func.func @_agg_dim_kernel(%arg0: i32, %arg1: i32, %arg2: i32, %arg3: memref<2x4x256xf32, #tpu.memory_space<vmem>>, %arg4: memref<2x256xf32, #tpu.memory_space<vmem>>) attributes {dimension_semantics = [#tpu.dimension_semantics<parallel>, #tpu.dimension_semantics<parallel>, #tpu.dimension_semantics<arbitrary>], iteration_bounds = array<i64: 1, 1, 1>, scalar_prefetch = 0 : i64, scratch_operands = 0 : i64, tpu.core_type = #tpu.core_type<tc>, window_params = [{transform_indices = @transform_0, window_bounds = array<i64: 2, 4, 256>}, {transform_indices = @transform_1, window_bounds = array<i64: 2, 256>}]} {
    %c0_i32 = arith.constant 0 : i32
    %0 = arith.cmpi eq, %arg2, %c0_i32 : i32
    %1 = arith.extui %0 : i1 to i32
    %c0_i32_0 = arith.constant 0 : i32
    %2 = arith.cmpi ne, %1, %c0_i32_0 : i32
    scf.if %2 {
      %cst_9 = arith.constant 0.000000e+00 : f32
      %11 = vector.broadcast %cst_9 : f32 to vector<2x256xf32>
      %c0_10 = arith.constant 0 : index
      %c0_11 = arith.constant 0 : index
      %12 = vector.load %arg4[%c0_10, %c0_11] : memref<2x256xf32, #tpu.memory_space<vmem>>, vector<2x256xf32>
      tpu.vector_store %arg4[%c0_10, %c0_11], %11 {strides = array<i32>} : memref<2x256xf32, #tpu.memory_space<vmem>>, vector<2x256xf32>,
    } else {
    }
    %c0 = arith.constant 0 : index
    %c0_1 = arith.constant 0 : index
    %c0_2 = arith.constant 0 : index
    %3 = vector.load %arg3[%c0, %c0_1, %c0_2] : memref<2x4x256xf32, #tpu.memory_space<vmem>>, vector<2x4x256xf32>
    %cst = arith.constant dense<0.000000e+00> : vector<2x256xf32>
    %4 = vector.multi_reduction <add>, %3, %cst [1] : vector<2x4x256xf32> to vector<2x256xf32>
    %c0_3 = arith.constant 0 : index
    %c0_4 = arith.constant 0 : index
    %5 = vector.load %arg4[%c0_3, %c0_4] : memref<2x256xf32, #tpu.memory_space<vmem>>, vector<2x256xf32>
    %6 = arith.addf %5, %4 : vector<2x256xf32>
    %c0_5 = arith.constant 0 : index
    %c0_6 = arith.constant 0 : index
    %7 = vector.load %arg4[%c0_5, %c0_6] : memref<2x256xf32, #tpu.memory_space<vmem>>, vector<2x256xf32>
    tpu.vector_store %arg4[%c0_5, %c0_6], %6 {strides = array<i32>} : memref<2x256xf32, #tpu.memory_space<vmem>>, vector<2x256xf32>,
    %c0_i32_7 = arith.constant 0 : i32
    %8 = arith.cmpi eq, %arg2, %c0_i32_7 : i32
    %9 = arith.extui %8 : i1 to i32
    %c0_i32_8 = arith.constant 0 : i32
    %10 = arith.cmpi ne, %9, %c0_i32_8 : i32
    scf.if %10 {
      %c0_9 = arith.constant 0 : index
      %c0_10 = arith.constant 0 : index
      %11 = vector.load %arg4[%c0_9, %c0_10] : memref<2x256xf32, #tpu.memory_space<vmem>>, vector<2x256xf32>
      %c0_11 = arith.constant 0 : index
      %c0_12 = arith.constant 0 : index
      %12 = vector.load %arg4[%c0_11, %c0_12] : memref<2x256xf32, #tpu.memory_space<vmem>>, vector<2x256xf32>
      tpu.vector_store %arg4[%c0_11, %c0_12], %11 {strides = array<i32>} : memref<2x256xf32, #tpu.memory_space<vmem>>, vector<2x256xf32>,
    } else {
    }
    return
  }
  func.func @transform_0(%arg0: i32, %arg1: i32, %arg2: i32) -> (i32, i32, i32) {
    %c0_i32 = arith.constant 0 : i32
    return %arg0, %arg2, %arg1 : i32, i32, i32
  }
  func.func @transform_1(%arg0: i32, %arg1: i32, %arg2: i32) -> (i32, i32) {
    %c0_i32 = arith.constant 0 : i32
    return %arg0, %arg1 : i32, i32
  }
}

</mosaic_0001>

<bundles_post_ra>
// kernel: tpu_custom_call.1
= control target key start
LH: loop header
LB: loop body
LE: loop exit
PB: predicated region body
PF: predicated region fallthrough
CT: control target
= control target key end

     0   :  { %6 = vsyncpa [#allocation3], 0  ;;  %s196_s0 = inlined_call_operand.hbm [shape: f32[2,4,256], index: 0, kind: input, shape index: {}]   ;;  %s197_s1 = inlined_call_operand.hbm [shape: f32[2,256], index: 1, kind: output, shape index: {}]  }
   0x1   :  { %7 = vsyncpa [#allocation4], 0  ;;  %s174_s6 = smov [#allocation2]  }
   0x2   :  { %s13_s7 = sshll.u32 %s174_s6, 4  ;;  %s14_s7 = int_to_ptr.vmem [resolvable:$true] %s13_s7 }
   0x3   :  { %s138_s8 = scalar_lea.vmem %s14_s7, 256  ;;  %p143_p1 = scmp.lt.s32.totalorder %s14_s7, %s14_s7 }
   0x4   :  { %p139_p0 = scmp.ne.s32.totalorder %s14_s7, %s138_s8  ;;  %p144_p2 = scmp.lt.s32.totalorder %s138_s8, %s138_s8 }
   0x6   :  { %p145_p3 = por %p144_p2, %p143_p1 }
   0x8   :  { %p146_p4 = pnand %p145_p3, %p139_p0 }
   0xa   :  { %149 = shalt.err (!%p146_p4)
}
   0xb   :  { %s175_s9 = smov 128   ;;  %s176_s10 = smov 8  }
   0xc   :  { %19 = dma.hbm_to_vmem [thread:$0]  %s196_s0, 256, %s14_s7, [#allocation3], %s175_s9, %s175_s9, %s176_s10  }
   0xd   :  { %170 = dma.done.wait [#allocation3], 256  }
   0xe   :  { %171 = vsyncadd [#allocation3], 4294967040  ;;  %v177_v0 = vmov 0.0   ;;  %vm36_vm0 = vcmask 1043456   ;;  %v28_v1 = vld [vmem:[#allocation2] sm:$0xff]  ;;  %v29_v2 = vld [vmem:[#allocation2 + $0x8] sm:$0xff]  ;;  %v74_v17 = vlaneseq }
   0xf   :  { %27 = vst [vmem:[#allocation5] sm:$0xf] %v177_v0  ;;  %v32_v3 = vcombine.high %v28_v1, %v28_v1  ;;  %v33_v4 = vcombine.high %v29_v2, %v29_v2  ;;  %v37_v5 = vsel %vm36_vm0, %v28_v1, 0.0  ;;  %v51_v6 = vsel %vm36_vm0, %v29_v2, 0.0  ;;  %s179_s0 = smov [#allocation5]  }
  0x10   :  { %v38_v7 = vrot.slane %v37_v5, 4  ;;  %v52_v8 = vrot.slane %v51_v6, 4  ;;  %v178_v15 = vmov 1983009808   ;;  %v75_v27 = vshrl.u32 %v74_v17, 7  ;;  %s113_s13 = sshll.u32 %s179_s0, 4  ;;  %s114_s13 = int_to_ptr.vmem [resolvable:$true] %s113_s13 }
  0x11   :  { %v44_v9 = vsel %vm36_vm0, %v32_v3, 0.0  ;;  %v58_v10 = vsel %vm36_vm0, %v33_v4, 0.0  ;;  %v72_v16 = vunpack.c.l.s4 %v178_v15  ;;  %vm91_vm1 = vcmask 1041409   ;;  %s150_s14 = scalar_lea.vmem %s114_s13, 64  ;;  %p155_p6 = scmp.lt.s32.totalorder %s114_s13, %s114_s13 }
  0x12   :  { %v39_v11 = vadd.f32 %v38_v7, %v37_v5  ;;  %v45_v12 = vrot.slane %v44_v9, 4  ;;  %v53_v13 = vadd.f32 %v52_v8, %v51_v6  ;;  %v59_v14 = vrot.slane %v58_v10, 4  ;;  %p151_p5 = scmp.ne.s32.totalorder %s114_s13, %s150_s14  ;;  %p156_p7 = scmp.lt.s32.totalorder %s150_s14, %s150_s14 }
  0x13   :  { %v73_v26 = vunpack.c.0.s8 %v72_v16  ;;  %vm93_vm2 = vcmask 1043459   ;;  %vm95_vm3 = vcmask 1045509   ;;  %vm97_vm4 = vcmask 1047559  }
  0x14   :  { %v40_v18 = vrot.slane %v39_v11, 2  ;;  %v46_v19 = vadd.f32 %v45_v12, %v44_v9  ;;  %v54_v20 = vrot.slane %v53_v13, 2  ;;  %v60_v21 = vadd.f32 %v59_v14, %v58_v10  ;;  %p157_p8 = por %p156_p7, %p155_p6 }
  0x15   :  { %v76_v38 = vsub.s32 %v73_v26, %v75_v27 }
  0x16   :  { %v41_v22 = vadd.f32 %v40_v18, %v39_v11  ;;  %v47_v23 = vrot.slane %v46_v19, 2  ;;  %v55_v24 = vadd.f32 %v54_v20, %v53_v13  ;;  %v61_v25 = vrot.slane %v60_v21, 2  ;;  %v65_v45 = vld [vmem:[#allocation5] sm:$0xf]  ;;  %p158_p9 = pnand %p157_p8, %p151_p5 }
  0x18   :  { %v42_v28 = vrot.slane %v41_v22, 1  ;;  %v48_v29 = vadd.f32 %v47_v23, %v46_v19  ;;  %v56_v30 = vrot.slane %v55_v24, 1  ;;  %v62_v31 = vadd.f32 %v61_v25, %v60_v21 }
  0x1a   :  { %v43_v32 = vadd.f32 %v42_v28, %v41_v22  ;;  %v49_v33 = vrot.slane %v48_v29, 1  ;;  %v57_v34 = vadd.f32 %v56_v30, %v55_v24  ;;  %v63_v35 = vrot.slane %v62_v31, 1 }
  0x1c   :  { %v50_v36 = vadd.f32 %v49_v33, %v48_v29  ;;  %v64_v37 = vadd.f32 %v63_v35, %v62_v31 }
  0x1e   :  { %v70_v39 = vcombine.low %v43_v32, %v50_v36  ;;  %v78_v40 = vcombine.low %v57_v34, %v64_v37 }
  0x20   :  { %v77_v41 = vrot.slane %v70_v39, %v76_v38  ;;  %v85_v42 = vrot.slane %v78_v40, %v76_v38 }
  0x22   :  { %v90_v43 = vrot.slane %v85_v42, 7 }
  0x24   :  { %v92_v44 = vsel %vm91_vm1, %v90_v43, %v77_v41 }
  0x25   :  { %v94_v46 = vsel %vm93_vm2, %v90_v43, %v92_v44 }
  0x26   :  { %v96_v47 = vsel %vm95_vm3, %v90_v43, %v94_v46 }
  0x27   :  { %v98_v48 = vsel %vm97_vm4, %v90_v43, %v96_v47 }
  0x28   :  { %v100_v49 = vadd.f32 %v98_v48, %v65_v45 }
  0x2a   :  { %101 = vst [vmem:[#allocation5] sm:$0xf] %v100_v49 }
  0x31   :  { %v105_v50 = vld [vmem:[#allocation5] sm:$0xf] }
  0x32   :  { %106 = vst [vmem:[#allocation5] sm:$0xf] %v105_v50 }
  0x33   :  { %161 = shalt.err (!%p158_p9)
}
  0x34   :  { %116 = dma.vmem_to_hbm [thread:$0]  %s114_s13, 64, %s197_s1, [#allocation4]  }
  0x35   :  { %172 = dma.done.wait [#allocation4], 64  }
  0x36   :  { %173 = vsyncadd [#allocation4], 4294967232 }
  0x37   :  { %120 = vsyncpa [#allocation3], 1 }
  0x38   :  { %121 = vsyncpa [#allocation4], 1 }

</bundles_post_ra>
